<compile_context>
chip_gen: v6e
topology: v6e:2x2x1
jax: 0.10.0
libtpu: 0.0.40
codegen_flags: <defaults>
</compile_context>

<pallas_src>
import functools

import jax
import jax.numpy as jnp
from jax.experimental import pallas as pl
from jax.experimental.pallas import tpu as pltpu

GEM_EPS = 1e-6


def _gem_kernel(p_ref, x_ref, o_ref, *, eps):
    """x_ref: (TB, H*W, C) channels-last tile; p_ref: (1,) f32 in SMEM.

    o_ref: (TB, C) = (mean_{hw} clamp(x, eps)^p)^(1/p)
    """
    p = p_ref[0]                                   # scalar (SMEM read)
    x = x_ref[...]                                 # (TB, HW, C)
    xc = jnp.maximum(x, eps)                       # clamp(min=eps)  > 0
    xp = jnp.exp(p * jnp.log(xc))                  # xc ** p   (EUP exp/log)
    m = jnp.mean(xp, axis=1)                       # global avg pool -> (TB, C)
    o_ref[...] = jnp.exp(jnp.log(m) * (1.0 / p))   # m ** (1/p)


def _pick_batch_tile(n, max_tile=8):
    # Output block is (TB, C); its second-to-last dim must be a multiple of 8
    # or equal the full batch.  Collapse the grid for small / awkward N.
    if n <= max_tile or n % 8 != 0:
        return n
    tb = max_tile - (max_tile % 8)
    tb = tb if tb > 0 else 8
    while n % tb:
        tb -= 8
    return tb


def gem_forward(x_nchw, p, *, eps=GEM_EPS, max_batch_tile=8):
    """GeM forward. x_nchw: (N, C, H, W); p: scalar / (1,). Returns (N, C, 1, 1)."""
    N, C, H, W = x_nchw.shape
    HW = H * W

    # Layout plumbing (outside the kernel): NCHW -> (N, H*W, C) channels-last.
    x = jnp.transpose(x_nchw, (0, 2, 3, 1)).reshape(N, HW, C).astype(jnp.float32)
    p = jnp.asarray(p, jnp.float32).reshape(1)

    tb = _pick_batch_tile(N, max_batch_tile)

    out = pl.pallas_call(
        functools.partial(_gem_kernel, eps=eps),
        out_shape=jax.ShapeDtypeStruct((N, C), jnp.float32),
        grid=(N // tb,),
        in_specs=[
            pl.BlockSpec(memory_space=pltpu.MemorySpace.SMEM),        # p scalar
            pl.BlockSpec((tb, HW, C), lambda i: (i, 0, 0)),           # image tile
        ],
        out_specs=pl.BlockSpec((tb, C), lambda i: (i, 0)),            # lane-dense
        compiler_params=pltpu.CompilerParams(
            dimension_semantics=("parallel",)),                       # v7x 2 TCs
    )(p, x)

    return out.reshape(N, C, 1, 1)


if __name__ == "__main__":
    key = jax.random.PRNGKey(0)
    kx, _ = jax.random.split(key)

    # Small shapes consistent with GeM's usual placement (pooling a backbone
    # feature map): batch=2, channels=128 (lane-dense), spatial 16x16.
    N, C, H, W = 2, 128, 16, 16
    x = jax.random.uniform(kx, (N, C, H, W), dtype=jnp.float32)   # NCHW
    p_param = jnp.ones((1,), jnp.float32) * 3.0                   # Parameter(ones(1)*p)

    y = gem_forward(x, p_param)
    jax.block_until_ready(y)
    assert y.shape == (N, C, 1, 1)

    # Pure-JAX reference (matches the PyTorch forward).
    p_val = 3.0
    ref = jnp.mean(jnp.maximum(x, GEM_EPS) ** p_val, axis=(2, 3)) ** (1.0 / p_val)
    ref = ref.reshape(N, C, 1, 1)
    assert jnp.allclose(y, ref, rtol=1e-4, atol=1e-4), \
        float(jnp.max(jnp.abs(y - ref)))

    print("KERNEL_OK")
</pallas_src>

<mosaic_0001>
module attributes {stable_mosaic.version = 11 : i64} {
  func.func @_gem_kernel(%arg0: i32, %arg1: memref<1xf32, #tpu.memory_space<smem>>, %arg2: memref<2x256x128xf32, #tpu.memory_space<vmem>>, %arg3: memref<2x128xf32, #tpu.memory_space<vmem>>) attributes {dimension_semantics = [#tpu.dimension_semantics<parallel>], iteration_bounds = array<i64: 1>, scalar_prefetch = 0 : i64, scratch_operands = 0 : i64, tpu.core_type = #tpu.core_type<tc>, window_params = [{transform_indices = @transform_0, window_bounds = array<i64: 1>}, {transform_indices = @transform_1, window_bounds = array<i64: 2, 256, 128>}, {transform_indices = @transform_2, window_bounds = array<i64: 2, 128>}]} {
    %c0 = arith.constant 0 : index
    %0 = memref.load %arg1[%c0] : memref<1xf32, #tpu.memory_space<smem>>
    %c0_0 = arith.constant 0 : index
    %c0_1 = arith.constant 0 : index
    %c0_2 = arith.constant 0 : index
    %1 = vector.load %arg2[%c0_0, %c0_1, %c0_2] : memref<2x256x128xf32, #tpu.memory_space<vmem>>, vector<2x256x128xf32>
    %cst = arith.constant 9.99999997E-7 : f32
    %2 = vector.broadcast %cst : f32 to vector<2x256x128xf32>
    %3 = arith.maximumf %1, %2 : vector<2x256x128xf32>
    %4 = math.log %3 : vector<2x256x128xf32>
    %5 = vector.broadcast %0 : f32 to vector<2x256x128xf32>
    %6 = arith.mulf %5, %4 : vector<2x256x128xf32>
    %7 = math.exp %6 : vector<2x256x128xf32>
    %cst_3 = arith.constant dense<0.000000e+00> : vector<2x128xf32>
    %8 = vector.multi_reduction <add>, %7, %cst_3 [1] : vector<2x256x128xf32> to vector<2x128xf32>
    %cst_4 = arith.constant 2.560000e+02 : f32
    %9 = vector.broadcast %cst_4 : f32 to vector<2x128xf32>
    %10 = arith.divf %8, %9 : vector<2x128xf32>
    %11 = math.log %10 : vector<2x128xf32>
    %cst_5 = arith.constant 1.000000e+00 : f32
    %12 = arith.divf %cst_5, %0 : f32
    %13 = vector.broadcast %12 : f32 to vector<2x128xf32>
    %14 = arith.mulf %11, %13 : vector<2x128xf32>
    %15 = math.exp %14 : vector<2x128xf32>
    %c0_6 = arith.constant 0 : index
    %c0_7 = arith.constant 0 : index
    %16 = vector.load %arg3[%c0_6, %c0_7] : memref<2x128xf32, #tpu.memory_space<vmem>>, vector<2x128xf32>
    tpu.vector_store %arg3[%c0_6, %c0_7], %15 {strides = array<i32>} : memref<2x128xf32, #tpu.memory_space<vmem>>, vector<2x128xf32>,
    return
  }
  func.func @transform_0(%arg0: i32) -> i32 {
    %c0_i32 = arith.constant 0 : i32
    %c0_i32_0 = arith.constant 0 : i32
    return %c0_i32 : i32
  }
  func.func @transform_1(%arg0: i32) -> (i32, i32, i32) {
    %c0_i32 = arith.constant 0 : i32
    %c0_i32_0 = arith.constant 0 : i32
    %c0_i32_1 = arith.constant 0 : i32
    return %arg0, %c0_i32, %c0_i32_0 : i32, i32, i32
  }
  func.func @transform_2(%arg0: i32) -> (i32, i32) {
    %c0_i32 = arith.constant 0 : i32
    %c0_i32_0 = arith.constant 0 : i32
    return %arg0, %c0_i32 : i32, i32
  }
}

</mosaic_0001>

<bundles_post_ra>
// kernel: tpu_custom_call.1
= control target key start
LH: loop header
LB: loop body
LE: loop exit
PB: predicated region body
PF: predicated region fallthrough
CT: control target
= control target key end

     0   :  { %8 = vsyncpa [#allocation4], 0  ;;  %s1362_s0 = inlined_call_operand.<no memory space> [shape: f32[1], index: 0, kind: input, shape index: {}]   ;;  %s1363_s1 = inlined_call_operand.hbm [shape: f32[2,256,128], index: 1, kind: input, shape index: {}]   ;;  %s1364_s2 = inlined_call_operand.hbm [shape: f32[2,128], index: 2, kind: output, shape index: {}]  }
   0x1   :  { %9 = vsyncpa [#allocation5], 0  ;;  %s905_s9 = smov [#allocation3]  }
   0x2   :  { %s17_s10 = sshll.u32 %s905_s9, 4  ;;  %s18_s10 = int_to_ptr.vmem [resolvable:$true] %s17_s10 }
   0x3   :  { %s869_s11 = scalar_lea.vmem %s18_s10, 8192  ;;  %p874_p1 = scmp.lt.s32.totalorder %s18_s10, %s18_s10 }
   0x4   :  { %p870_p0 = scmp.ne.s32.totalorder %s18_s10, %s869_s11  ;;  %p875_p2 = scmp.lt.s32.totalorder %s869_s11, %s869_s11 }
   0x6   :  { %p876_p3 = por %p875_p2, %p874_p1 }
   0x8   :  { %p877_p4 = pnand %p876_p3, %p870_p0 }
   0xa   :  { %880 = shalt.err (!%p877_p4)
}
   0xb   :  { %s906_s12 = smov 128   ;;  %s907_s13 = smov 8  }
   0xc   :  { %23 = dma.hbm_to_vmem [thread:$0]  %s1363_s1, 8192, %s18_s10, [#allocation4], %s906_s12, %s906_s12, %s907_s13  }
   0xd   :  { %901 = dma.done.wait [#allocation4], 8192  }
   0xe   :  { %902 = vsyncadd [#allocation4], 4294959104  ;;  %v28_v0 = vld [vmem:[#allocation3] sm:$0xff]  ;;  %v29_v1 = vld [vmem:[#allocation3 + $0x8] sm:$0xff]  ;;  %s908_s17 = smov [#allocation6]   ;;  %vm570_vm0 = vcmask 1041409  }
   0xf   :  { %v30_v2 = vld [vmem:[#allocation3 + $0x10] sm:$0xff]  ;;  %v31_v3 = vld [vmem:[#allocation3 + $0x18] sm:$0xff]  ;;  %v92_v4 = vmax.f32 %v28_v0, 1e-06  ;;  %v32_v5 = vld [vmem:[#allocation3 + $0x20] sm:$0xff]  ;;  %s580_s18 = sshll.u32 %s908_s17, 4  ;;  %s581_s18 = int_to_ptr.vmem [resolvable:$true] %s580_s18 }
  0x10   :  { %v93_v6 = vmax.f32 %v29_v1, 1e-06  ;;  %v33_v7 = vld [vmem:[#allocation3 + $0x28] sm:$0xff]  ;;  %v94_v8 = vmax.f32 %v30_v2, 1e-06  ;;  %v34_v9 = vld [vmem:[#allocation3 + $0x30] sm:$0xff]  ;;  %p886_p6 = scmp.lt.s32.totalorder %s581_s18, %s581_s18 }
  0x11   :  { %v95_v10 = vmax.f32 %v31_v3, 1e-06  ;;  %v35_v11 = vld [vmem:[#allocation3 + $0x38] sm:$0xff]  ;;  %v96_v12 = vmax.f32 %v32_v5, 1e-06  ;;  %595 = vlog2.f32 %v92_v4  ;;  %v36_v13 = vld [vmem:[#allocation3 + $0x40] sm:$0xff] }
  0x12   :  { %v97_v14 = vmax.f32 %v33_v7, 1e-06  ;;  %597 = vlog2.f32 %v93_v6  ;;  %v37_v15 = vld [vmem:[#allocation3 + $0x48] sm:$0xff]  ;;  %v98_v16 = vmax.f32 %v34_v9, 1e-06  ;;  %v38_v17 = vld [vmem:[#allocation3 + $0x50] sm:$0xff] }
  0x13   :  { %599 = vlog2.f32 %v94_v8  ;;  %v99_v18 = vmax.f32 %v35_v11, 1e-06  ;;  %v39_v19 = vld [vmem:[#allocation3 + $0x58] sm:$0xff]  ;;  %v100_v20 = vmax.f32 %v36_v13, 1e-06  ;;  %v40_v21 = vld [vmem:[#allocation3 + $0x60] sm:$0xff] }
  0x14   :  { %601 = vlog2.f32 %v95_v10  ;;  %v101_v22 = vmax.f32 %v37_v15, 1e-06  ;;  %v41_v23 = vld [vmem:[#allocation3 + $0x68] sm:$0xff]  ;;  %v102_v24 = vmax.f32 %v38_v17, 1e-06  ;;  %v42_v25 = vld [vmem:[#allocation3 + $0x70] sm:$0xff] }
  0x15   :  { %603 = vlog2.f32 %v96_v12  ;;  %v103_v26 = vmax.f32 %v39_v19, 1e-06  ;;  %v43_v27 = vld [vmem:[#allocation3 + $0x78] sm:$0xff]  ;;  %v104_v28 = vmax.f32 %v40_v21, 1e-06  ;;  %v44_v29 = vld [vmem:[#allocation3 + $0x80] sm:$0xff] }
  0x16   :  { %605 = vlog2.f32 %v97_v14  ;;  %v105_v30 = vmax.f32 %v41_v23, 1e-06  ;;  %v45_v31 = vld [vmem:[#allocation3 + $0x88] sm:$0xff]  ;;  %v106_v32 = vmax.f32 %v42_v25, 1e-06  ;;  %v46_v33 = vld [vmem:[#allocation3 + $0x90] sm:$0xff] }
  0x17   :  { %607 = vlog2.f32 %v98_v16  ;;  %v107_v34 = vmax.f32 %v43_v27, 1e-06  ;;  %v47_v35 = vld [vmem:[#allocation3 + $0x98] sm:$0xff]  ;;  %v108_v36 = vmax.f32 %v44_v29, 1e-06  ;;  %v48_v38 = vld [vmem:[#allocation3 + $0xa0] sm:$0xff] }
  0x18   :  { %609 = vlog2.f32 %v99_v18  ;;  %v109_v39 = vmax.f32 %v45_v31, 1e-06  ;;  %v49_v41 = vld [vmem:[#allocation3 + $0xa8] sm:$0xff]  ;;  %v110_v42 = vmax.f32 %v46_v33, 1e-06  ;;  %v50_v44 = vld [vmem:[#allocation3 + $0xb0] sm:$0xff] }
  0x19   :  { %611 = vlog2.f32 %v100_v20  ;;  %v111_v45 = vmax.f32 %v47_v35, 1e-06  ;;  %v51_v47 = vld [vmem:[#allocation3 + $0xb8] sm:$0xff]  ;;  %v112_v48 = vmax.f32 %v48_v38, 1e-06  ;;  %v52_v50 = vld [vmem:[#allocation3 + $0xc0] sm:$0xff] }
  0x1a   :  { %613 = vlog2.f32 %v101_v22  ;;  %v113_v51 = vmax.f32 %v49_v41, 1e-06  ;;  %v53_v53 = vld [vmem:[#allocation3 + $0xc8] sm:$0xff]  ;;  %v114_v54 = vmax.f32 %v50_v44, 1e-06  ;;  %v54_v56 = vld [vmem:[#allocation3 + $0xd0] sm:$0xff] }
  0x1b   :  { %615 = vlog2.f32 %v102_v24  ;;  %v115_v57 = vmax.f32 %v51_v47, 1e-06  ;;  %v55_v59 = vld [vmem:[#allocation3 + $0xd8] sm:$0xff]  ;;  %v116_v60 = vmax.f32 %v52_v50, 1e-06  ;;  %v56_v62 = vld [vmem:[#allocation3 + $0xe0] sm:$0xff] }
  0x1c   :  { %617 = vlog2.f32 %v103_v26  ;;  %v117_v63 = vmax.f32 %v53_v53, 1e-06  ;;  %v57_v1 = vld [vmem:[#allocation3 + $0xe8] sm:$0xff]  ;;  %v118_v2 = vmax.f32 %v54_v56, 1e-06  ;;  %v58_v4 = vld [vmem:[#allocation3 + $0xf0] sm:$0xff] }
  0x1d   :  { %619 = vlog2.f32 %v104_v28  ;;  %v119_v5 = vmax.f32 %v55_v59, 1e-06  ;;  %v59_v7 = vld [vmem:[#allocation3 + $0xf8] sm:$0xff]  ;;  %v120_v8 = vmax.f32 %v56_v62, 1e-06  ;;  %v60_v10 = vld [vmem:[#allocation3 + $0x100] sm:$0xff] }
  0x1e   :  { %v927_v37 = vpop.eup %595  ;;  %621 = vlog2.f32 %v105_v30  ;;  %v121_v11 = vmax.f32 %v57_v1, 1e-06  ;;  %v61_v13 = vld [vmem:[#allocation3 + $0x108] sm:$0xff]  ;;  %v122_v14 = vmax.f32 %v58_v4, 1e-06  ;;  %v62_v16 = vld [vmem:[#allocation3 + $0x110] sm:$0xff] }
  0x1f   :  { %v929_v40 = vpop.eup %597  ;;  %623 = vlog2.f32 %v106_v32  ;;  %v123_v17 = vmax.f32 %v59_v7, 1e-06  ;;  %v63_v19 = vld [vmem:[#allocation3 + $0x118] sm:$0xff]  ;;  %v124_v20 = vmax.f32 %v60_v10, 1e-06  ;;  %v64_v22 = vld [vmem:[#allocation3 + $0x120] sm:$0xff] }
  0x20   :  { %v931_v43 = vpop.eup %599  ;;  %625 = vlog2.f32 %v107_v34  ;;  %v125_v23 = vmax.f32 %v61_v13, 1e-06  ;;  %v65_v25 = vld [vmem:[#allocation3 + $0x128] sm:$0xff]  ;;  %v126_v26 = vmax.f32 %v62_v16, 1e-06  ;;  %v66_v28 = vld [vmem:[#allocation3 + $0x130] sm:$0xff] }
  0x21   :  { %v933_v46 = vpop.eup %601  ;;  %627 = vlog2.f32 %v108_v36  ;;  %v127_v29 = vmax.f32 %v63_v19, 1e-06  ;;  %v67_v31 = vld [vmem:[#allocation3 + $0x138] sm:$0xff]  ;;  %v128_v32 = vmax.f32 %v64_v22, 1e-06  ;;  %v68_v34 = vld [vmem:[#allocation3 + $0x140] sm:$0xff] }
  0x22   :  { %v935_v49 = vpop.eup %603  ;;  %629 = vlog2.f32 %v109_v39  ;;  %v129_v35 = vmax.f32 %v65_v25, 1e-06  ;;  %v69_v38 = vld [vmem:[#allocation3 + $0x148] sm:$0xff]  ;;  %v130_v39 = vmax.f32 %v66_v28, 1e-06  ;;  %v71_v47 = vld [vmem:[#allocation3 + $0x158] sm:$0xff] }
  0x23   :  { %v937_v52 = vpop.eup %605  ;;  %631 = vlog2.f32 %v110_v42  ;;  %v70_v42 = vld [vmem:[#allocation3 + $0x150] sm:$0xff]  ;;  %v131_v44 = vmax.f32 %v67_v31, 1e-06  ;;  %v73_v53 = vld [vmem:[#allocation3 + $0x168] sm:$0xff]  ;;  %v75_v59 = vld [vmem:[#allocation3 + $0x178] sm:$0xff]  ;;  %v1012_v31 = vstv %s1362_s0  ;;  %s881_s19 = scalar_lea.vmem %s581_s18, 32 }
  0x24   :  { %v939_v55 = vpop.eup %607  ;;  %633 = vlog2.f32 %v111_v45  ;;  %v134_v62 = vmax.f32 %v70_v42, 1e-06  ;;  %v77_v1 = vld [vmem:[#allocation3 + $0x188] sm:$0xff]  ;;  %v983_v4 = vld [vmem:[#allocation3 + $0x198] sm:$0xff]  ;;  %p882_p5 = scmp.ne.s32.totalorder %s581_s18, %s881_s19  ;;  %p887_p7 = scmp.lt.s32.totalorder %s881_s19, %s881_s19 }
  0x25   :  { %v941_v58 = vpop.eup %609  ;;  %635 = vlog2.f32 %v112_v48  ;;  %v132_v48 = vmax.f32 %v68_v34, 1e-06  ;;  %v989_v10 = vld [vmem:[#allocation3 + $0x1a8] sm:$0xff]  ;;  %v995_v16 = vld [vmem:[#allocation3 + $0x1b8] sm:$0xff] }
  0x26   :  { %v943_v61 = vpop.eup %611  ;;  %637 = vlog2.f32 %v113_v51  ;;  %v72_v51 = vld [vmem:[#allocation3 + $0x160] sm:$0xff]  ;;  %v999_v19 = vld [vmem:[#allocation3 + $0x1c8] sm:$0xff]  ;;  %v1005_v25 = vld [vmem:[#allocation3 + $0x1d8] sm:$0xff]  ;;  %p888_p8 = por %p887_p7, %p886_p6 }
  0x27   :  { %v945_v0 = vpop.eup %613  ;;  %639 = vlog2.f32 %v114_v54  ;;  %v133_v54 = vmax.f32 %v69_v38, 1e-06  ;;  %v136_v13 = vmax.f32 %v72_v51, 1e-06  ;;  %v1016_v34 = vld [vmem:[#allocation3 + $0x1e8] sm:$0xff] }
  0x28   :  { %v947_v3 = vpop.eup %615  ;;  %641 = vlog2.f32 %v115_v57  ;;  %v74_v57 = vld [vmem:[#allocation3 + $0x170] sm:$0xff]  ;;  %p889_p9 = pnand %p888_p8, %p882_p5 }
  0x29   :  { %v949_v6 = vpop.eup %617  ;;  %643 = vlog2.f32 %v116_v60  ;;  %v76_v60 = vld [vmem:[#allocation3 + $0x180] sm:$0xff]  ;;  %v138_v28 = vmax.f32 %v74_v57, 1e-06 }
  0x2a   :  { %v951_v9 = vpop.eup %619  ;;  %645 = vlog2.f32 %v117_v63  ;;  %v140_v38 = vmax.f32 %v76_v60, 1e-06  ;;  %v157_v60 = vmul.f32 0.6931472, %v927_v37 }
  0x2b   :  { %v953_v12 = vpop.eup %621  ;;  %647 = vlog2.f32 %v118_v2  ;;  %v981_v2 = vld [vmem:[#allocation3 + $0x190] sm:$0xff] }
  0x2c   :  { %v955_v15 = vpop.eup %623  ;;  %649 = vlog2.f32 %v119_v5  ;;  %v135_v5 = vmax.f32 %v71_v47, 1e-06  ;;  %v142_v42 = vmax.f32 %v981_v2, 1e-06  ;;  %v1023_v47 = vld [vmem:[#allocation3 + $0x1f8] sm:$0xff] }
  0x2d   :  { %v957_v18 = vpop.eup %625  ;;  %651 = vlog2.f32 %v120_v8  ;;  %v987_v8 = vld [vmem:[#allocation3 + $0x1a0] sm:$0xff]  ;;  %v149_v2 = vmax.f32 %v999_v19, 1e-06 }
  0x2e   :  { %v959_v21 = vpop.eup %627  ;;  %653 = vlog2.f32 %v121_v11  ;;  %v991_v11 = vld [vmem:[#allocation3 + $0x1b0] sm:$0xff]  ;;  %v144_v51 = vmax.f32 %v987_v8, 1e-06 }
  0x2f   :  { %v961_v24 = vpop.eup %629  ;;  %655 = vlog2.f32 %v122_v14  ;;  %v146_v57 = vmax.f32 %v991_v11, 1e-06 }
  0x30   :  { %v963_v27 = vpop.eup %631  ;;  %657 = vlog2.f32 %v123_v17  ;;  %v997_v17 = vld [vmem:[#allocation3 + $0x1c0] sm:$0xff] }
  0x31   :  { %v965_v30 = vpop.eup %633  ;;  %659 = vlog2.f32 %v124_v20  ;;  %v137_v20 = vmax.f32 %v73_v53, 1e-06  ;;  %v145_v53 = vmax.f32 %v989_v10, 1e-06  ;;  %v285_v10 = vmul.f32 %v1012_v31, %v157_v60 }
  0x32   :  { %v967_v33 = vpop.eup %635  ;;  %661 = vlog2.f32 %v125_v23  ;;  %v1003_v23 = vld [vmem:[#allocation3 + $0x1d0] sm:$0xff]  ;;  %v1068_v60 = vmul.f32 0.6931472, %v945_v0  ;;  %v1085_v0 = vmul.f32 0.6931472, %v953_v12 }
  0x33   :  { %v969_v36 = vpop.eup %637  ;;  %663 = vlog2.f32 %v126_v26  ;;  %v1007_v26 = vld [vmem:[#allocation3 + $0x1e0] sm:$0xff]  ;;  %v150_v8 = vmax.f32 %v1003_v23, 1e-06  ;;  %v1102_v12 = vmul.f32 0.6931472, %v961_v24 }
  0x34   :  { %v971_v41 = vpop.eup %639  ;;  %665 = vlog2.f32 %v127_v29  ;;  %v139_v29 = vmax.f32 %v75_v59, 1e-06  ;;  %v147_v59 = vmax.f32 %v995_v16, 1e-06  ;;  %v1119_v24 = vmul.f32 0.6931472, %v969_v36 }
  0x35   :  { %v973_v45 = vpop.eup %641  ;;  %667 = vlog2.f32 %v128_v32 }
  0x36   :  { %v975_v50 = vpop.eup %643  ;;  %669 = vlog2.f32 %v129_v35  ;;  %v1018_v35 = vld [vmem:[#allocation3 + $0x1f0] sm:$0xff] }
  0x37   :  { %v977_v56 = vpop.eup %645  ;;  %671 = vlog2.f32 %v130_v39  ;;  %v141_v39 = vmax.f32 %v77_v1, 1e-06  ;;  %v148_v1 = vmax.f32 %v997_v17, 1e-06  ;;  %v161_v17 = vmul.f32 0.6931472, %v931_v43 }
  0x38   :  { %v979_v63 = vpop.eup %647  ;;  %673 = vlog2.f32 %v131_v44 }
  0x39   :  { %v985_v7 = vpop.eup %649  ;;  %675 = vlog2.f32 %v132_v48  ;;  %v143_v48 = vmax.f32 %v983_v4, 1e-06  ;;  %v159_v4 = vmul.f32 0.6931472, %v929_v40 }
  0x3a   :  { %v993_v14 = vpop.eup %651  ;;  %677 = vlog2.f32 %v133_v54 }
  0x3b   :  { %v1001_v22 = vpop.eup %653  ;;  %679 = vlog2.f32 %v134_v62  ;;  %v286_v16 = vmul.f32 %v1012_v31, %v159_v4  ;;  %v1150_v19 = vmul.f32 0.6931472, %v993_v14 }
  0x3c   :  { %v1014_v32 = vpop.eup %655  ;;  %681 = vlog2.f32 %v135_v5 }
  0x3d   :  { %v1021_v44 = vpop.eup %657  ;;  %683 = vlog2.f32 %v136_v13  ;;  %v167_v13 = vmul.f32 0.6931472, %v937_v52  ;;  %v287_v52 = vmul.f32 %v1012_v31, %v161_v17  ;;  %v1091_v17 = vmul.f32 0.6931472, %v955_v15 }
  0x3e   :  { %v1028_v54 = vpop.eup %659  ;;  %685 = vlog2.f32 %v137_v20  ;;  %v171_v20 = vmul.f32 0.6931472, %v941_v58  ;;  %v1080_v58 = vmul.f32 0.6931472, %v951_v9  ;;  %v1097_v9 = vmul.f32 0.6931472, %v959_v21 }
  0x3f   :  { %v1033_v62 = vpop.eup %661  ;;  %687 = vlog2.f32 %v138_v28  ;;  %v163_v28 = vmul.f32 0.6931472, %v933_v46  ;;  %v1063_v46 = vmul.f32 0.6931472, %v943_v61  ;;  %v349_v61 = vmul.f32 1.442695, %v285_v10 }
  0x40   :  { %v1038_v5 = vpop.eup %663  ;;  %689 = vlog2.f32 %v139_v29  ;;  %v165_v29 = vmul.f32 0.6931472, %v935_v49  ;;  %v1071_v49 = vmul.f32 0.6931472, %v947_v3  ;;  %v353_v10 = vmul.f32 1.442695, %v287_v52 }
  0x41   :  { %v1043_v37 = vpop.eup %665  ;;  %691 = vlog2.f32 %v140_v38  ;;  %v169_v38 = vmul.f32 0.6931472, %v939_v55  ;;  %v1077_v55 = vmul.f32 0.6931472, %v949_v6  ;;  %v288_v3 = vmul.f32 %v1012_v31, %v163_v28 }
  0x42   :  { %v1048_v40 = vpop.eup %667  ;;  %693 = vlog2.f32 %v141_v39  ;;  %v1094_v6 = vmul.f32 0.6931472, %v957_v18  ;;  %v1108_v15 = vmul.f32 0.6931472, %v963_v27  ;;  %v1111_v18 = vmul.f32 0.6931472, %v965_v30 }
  0x43   :  { %v1053_v11 = vpop.eup %669  ;;  %695 = vlog2.f32 %v142_v42  ;;  %v1114_v21 = vmul.f32 0.6931472, %v967_v33  ;;  %v355_v28 = vmul.f32 1.442695, %v288_v3  ;;  %v1125_v27 = vmul.f32 0.6931472, %v971_v41 }
  0x44   :  { %v1058_v43 = vpop.eup %671  ;;  %697 = vlog2.f32 %v143_v48  ;;  %v1128_v30 = vmul.f32 0.6931472, %v973_v45  ;;  %v1131_v33 = vmul.f32 0.6931472, %v975_v50  ;;  %v291_v52 = vmul.f32 %v1012_v31, %v169_v38 }
  0x45   :  { %v1065_v39 = vpop.eup %673  ;;  %699 = vlog2.f32 %v144_v51  ;;  %v351_v51 = vmul.f32 1.442695, %v286_v16  ;;  %v1144_v45 = vmul.f32 0.6931472, %v979_v63  ;;  %v1147_v50 = vmul.f32 0.6931472, %v985_v7 }
  0x46   :  { %v1074_v42 = vpop.eup %675  ;;  %701 = vlog2.f32 %v145_v53  ;;  %v292_v38 = vmul.f32 %v1012_v31, %v171_v20  ;;  %v1163_v7 = vmul.f32 0.6931472, %v1014_v32  ;;  %v1166_v14 = vmul.f32 0.6931472, %v1021_v44 }
  0x47   :  { %v1082_v48 = vpop.eup %677  ;;  %703 = vlog2.f32 %v146_v57  ;;  %v289_v57 = vmul.f32 %v1012_v31, %v165_v29  ;;  %v221_v23 = vmul.f32 0.6931472, %v1028_v54  ;;  %v293_v20 = vmul.f32 %v1012_v31, %v1063_v46 }
  0x48   :  { %v1088_v4 = vpop.eup %679  ;;  %705 = vlog2.f32 %v147_v59  ;;  %v225_v32 = vmul.f32 0.6931472, %v1038_v5  ;;  %v1366_v44 = vmax.f32 %v1007_v26, 1e-06  ;;  %v295_v54 = vmul.f32 %v1012_v31, %v1071_v49 }
  0x49   :  { %v1099_v53 = vpop.eup %681  ;;  %707 = vlog2.f32 %v148_v1  ;;  %v290_v1 = vmul.f32 %v1012_v31, %v167_v13  ;;  %v1138_v13 = vmul.f32 0.6931472, %v977_v56  ;;  %v297_v46 = vmul.f32 %v1012_v31, %v1080_v58 }
  0x4a   :  { %v1105_v16 = vpop.eup %683  ;;  %709 = vpow2.f32 %v349_v61  ;;  %v357_v61 = vmul.f32 1.442695, %v289_v57  ;;  %v361_v57 = vmul.f32 1.442695, %v291_v52  ;;  %v227_v26 = vmul.f32 0.6931472, %v1043_v37 }
  0x4b   :  { %v1116_v59 = vpop.eup %685  ;;  %711 = vpow2.f32 %v351_v51  ;;  %v359_v3 = vmul.f32 1.442695, %v290_v1  ;;  %v1367_v52 = vmax.f32 %v1016_v34, 1e-06  ;;  %v299_v49 = vmul.f32 %v1012_v31, %v1091_v17 }
  0x4c   :  { %v1122_v29 = vpop.eup %687  ;;  %713 = vlog2.f32 %v149_v2  ;;  %v1157_v2 = vmul.f32 0.6931472, %v1001_v22  ;;  %v223_v22 = vmul.f32 0.6931472, %v1033_v62  ;;  %v296_v62 = vmul.f32 %v1012_v31, %v1077_v55 }
  0x4d   :  { %v1135_v36 = vpop.eup %689  ;;  %715 = vpow2.f32 %v353_v10  ;;  %v229_v55 = vmul.f32 0.6931472, %v1048_v40  ;;  %v300_v58 = vmul.f32 %v1012_v31, %v1094_v6  ;;  %v231_v34 = vmul.f32 0.6931472, %v1053_v11 }
  0x4e   :  { %v1141_v41 = vpop.eup %691  ;;  %717 = vlog2.f32 %v150_v8  ;;  %v1365_v8 = vmax.f32 %v1005_v25, 1e-06  ;;  %v294_v25 = vmul.f32 %v1012_v31, %v1068_v60  ;;  %v298_v60 = vmul.f32 %v1012_v31, %v1085_v0 }
  0x4f   :  { %v1154_v56 = vpop.eup %693  ;;  %719 = vpow2.f32 %v355_v28  ;;  %v363_v28 = vmul.f32 1.442695, %v292_v38  ;;  %v365_v38 = vmul.f32 1.442695, %v293_v20  ;;  %v1368_v37 = vmax.f32 %v1018_v35, 1e-06 }
  0x50   :  { %v1160_v63 = vpop.eup %695  ;;  %721 = vlog2.f32 %v1365_v8  ;;  %v301_v0 = vmul.f32 %v1012_v31, %v1097_v9  ;;  %v367_v17 = vmul.f32 1.442695, %v294_v25  ;;  %v1214_v40 = vmul.f32 %v1012_v31, %v1102_v12 }
  0x51   :  { %v1171_v51 = vpop.eup %697  ;;  %723 = vpow2.f32 %v357_v61  ;;  %v1218_v6 = vmul.f32 %v1012_v31, %v1108_v15  ;;  %v369_v20 = vmul.f32 1.442695, %v295_v54  ;;  %v233_v11 = vmul.f32 0.6931472, %v1058_v43 }
  0x52   :  { %v1176_v10 = vpop.eup %699  ;;  %725 = vlog2.f32 %v1366_v44  ;;  %v1369_v35 = vmax.f32 %v1023_v47, 1e-06  ;;  %v317_v9 = vmul.f32 %v1012_v31, %v221_v23  ;;  %v371_v44 = vmul.f32 1.442695, %v296_v62 }
  0x53   :  { %v1185_v1 = vpop.eup %701  ;;  %727 = vpow2.f32 %v359_v3  ;;  %v1228_v12 = vmul.f32 %v1012_v31, %v1111_v18  ;;  %v318_v15 = vmul.f32 %v1012_v31, %v223_v22  ;;  %v1233_v43 = vmul.f32 %v1012_v31, %v1114_v21 }
  0x54   :  { %v1191_v5 = vpop.eup %703  ;;  %729 = vlog2.f32 %v1367_v52  ;;  %v319_v47 = vmul.f32 %v1012_v31, %v225_v32  ;;  %v375_v23 = vmul.f32 1.442695, %v298_v60  ;;  %v320_v52 = vmul.f32 %v1012_v31, %v227_v26 }
  0x55   :  { %v1200_v61 = vpop.eup %705  ;;  %731 = vpow2.f32 %v361_v57  ;;  %v377_v18 = vmul.f32 1.442695, %v299_v49  ;;  %v235_v22 = vmul.f32 0.6931472, %v1065_v39  ;;  %v413_v21 = vmul.f32 1.442695, %v317_v9 }
  0x56   :  { %v1205_v3 = vpop.eup %707  ;;  %733 = vlog2.f32 %v1368_v37  ;;  %v321_v32 = vmul.f32 %v1012_v31, %v229_v55  ;;  %v415_v60 = vmul.f32 1.442695, %v318_v15  ;;  %v237_v49 = vmul.f32 0.6931472, %v1074_v42 }
  0x57   :  { %v710_v8 = vpop.eup %709  ;;  %735 = vpow2.f32 %v363_v28  ;;  %v373_v28 = vmul.f32 1.442695, %v297_v46  ;;  %v1242_v46 = vmul.f32 %v1012_v31, %v1119_v24  ;;  %v417_v39 = vmul.f32 1.442695, %v319_v47 }
  0x58   :  { %v712_v57 = vpop.eup %711  ;;  %737 = vlog2.f32 %v1369_v35  ;;  %v1261_v42 = vmul.f32 %v1012_v31, %v1131_v33 }
  0x59   :  { %v1224_v25 = vpop.eup %713  ;;  %739 = vpow2.f32 %v365_v38  ;;  %v477_v37 = vadd.f32 %v712_v57, %v710_v8  ;;  %v1250_v8 = vmul.f32 %v1012_v31, %v1125_v27  ;;  %v419_v57 = vmul.f32 1.442695, %v320_v52 }
  0x5a   :  { %v716_v54 = vpop.eup %715  ;;  %741 = vpow2.f32 %v367_v17  ;;  %v379_v27 = vmul.f32 1.442695, %v300_v58  ;;  %v381_v52 = vmul.f32 1.442695, %v301_v0  ;;  %v324_v58 = vmul.f32 %v1012_v31, %v235_v22 }
  0x5b   :  { %v1236_v62 = vpop.eup %717  ;;  %743 = vpow2.f32 %v369_v20  ;;  %v478_v17 = vadd.f32 %v716_v54, %v477_v37  ;;  %v322_v20 = vmul.f32 %v1012_v31, %v231_v34  ;;  %v421_v34 = vmul.f32 1.442695, %v321_v32 }
  0x5c   :  { %v720_v35 = vpop.eup %719  ;;  %745 = vpow2.f32 %v371_v44  ;;  %v1257_v44 = vmul.f32 %v1012_v31, %v1128_v30  ;;  %v1269_v30 = vmul.f32 %v1012_v31, %v1138_v13  ;;  %v325_v0 = vmul.f32 %v1012_v31, %v237_v49 }
  0x5d   :  { %v1244_v38 = vpop.eup %721  ;;  %747 = vpow2.f32 %v373_v28  ;;  %v479_v9 = vadd.f32 %v720_v35, %v478_v17  ;;  %v323_v28 = vmul.f32 %v1012_v31, %v233_v11  ;;  %v241_v35 = vmul.f32 0.6931472, %v1088_v4 }
  0x5e   :  { %v724_v26 = vpop.eup %723  ;;  %749 = vpow2.f32 %v375_v23  ;;  %v239_v23 = vmul.f32 0.6931472, %v1082_v48  ;;  %v383_v48 = vmul.f32 1.442695, %v1214_v40  ;;  %v243_v17 = vmul.f32 0.6931472, %v1099_v53 }
  0x5f   :  { %v1252_v24 = vpop.eup %725  ;;  %751 = vpow2.f32 %v377_v18  ;;  %v480_v54 = vadd.f32 %v724_v26, %v479_v9  ;;  %v423_v18 = vmul.f32 1.442695, %v322_v20  ;;  %v425_v32 = vmul.f32 1.442695, %v323_v28 }
  0x60   :  { %v728_v55 = vpop.eup %727  ;;  %753 = vpow2.f32 %v413_v21  ;;  %v1277_v21 = vmul.f32 %v1012_v31, %v1144_v45  ;;  %v1286_v4 = vmul.f32 %v1012_v31, %v1147_v50  ;;  %v385_v45 = vmul.f32 1.442695, %v1218_v6 }
  0x61   :  { %v1263_v15 = vpop.eup %729  ;;  %755 = vpow2.f32 %v415_v60  ;;  %v481_v37 = vadd.f32 %v728_v55, %v480_v54  ;;  %v326_v40 = vmul.f32 %v1012_v31, %v239_v23  ;;  %v1293_v9 = vmul.f32 %v1012_v31, %v1150_v19 }
  0x62   :  { %v732_v47 = vpop.eup %731  ;;  %757 = vpow2.f32 %v417_v39  ;;  %v427_v39 = vmul.f32 1.442695, %v324_v58  ;;  %v387_v53 = vmul.f32 1.442695, %v1228_v12  ;;  %v327_v55 = vmul.f32 %v1012_v31, %v241_v35 }
  0x63   :  { %v1271_v33 = vpop.eup %733  ;;  %759 = vpow2.f32 %v419_v57  ;;  %v482_v22 = vadd.f32 %v732_v47, %v481_v37  ;;  %v245_v57 = vmul.f32 0.6931472, %v1105_v16  ;;  %v429_v6 = vmul.f32 1.442695, %v325_v0 }
  0x64   :  { %v736_v11 = vpop.eup %735  ;;  %761 = vpow2.f32 %v379_v27  ;;  %v1300_v54 = vmul.f32 %v1012_v31, %v1157_v2  ;;  %v389_v16 = vmul.f32 1.442695, %v1233_v43  ;;  %v328_v47 = vmul.f32 %v1012_v31, %v243_v17 }
  0x65   :  { %v1280_v13 = vpop.eup %737  ;;  %763 = vpow2.f32 %v421_v34  ;;  %v483_v20 = vadd.f32 %v736_v11, %v482_v22  ;;  %v247_v34 = vmul.f32 0.6931472, %v1116_v59  ;;  %v431_v12 = vmul.f32 1.442695, %v326_v40 }
  0x66   :  { %v740_v60 = vpop.eup %739  ;;  %765 = vpow2.f32 %v381_v52  ;;  %v249_v58 = vmul.f32 0.6931472, %v1122_v29  ;;  %v391_v59 = vmul.f32 1.442695, %v1242_v46  ;;  %v329_v37 = vmul.f32 %v1012_v31, %v245_v57 }
  0x67   :  { %v742_v26 = vpop.eup %741  ;;  %767 = vpow2.f32 %v423_v18  ;;  %v484_v27 = vadd.f32 %v740_v60, %v483_v20  ;;  %v1307_v18 = vmul.f32 %v1012_v31, %v1163_v7  ;;  %v433_v43 = vmul.f32 1.442695, %v327_v55 }
  0x68   :  { %v744_v49 = vpop.eup %743  ;;  %769 = vpow2.f32 %v383_v48  ;;  %v251_v48 = vmul.f32 0.6931472, %v1135_v36  ;;  %v330_v0 = vmul.f32 %v1012_v31, %v247_v34  ;;  %v393_v29 = vmul.f32 1.442695, %v1250_v8 }
  0x69   :  { %v746_v50 = vpop.eup %745  ;;  %771 = vpow2.f32 %v425_v32  ;;  %v485_v23 = vadd.f32 %v742_v26, %v484_v27  ;;  %v435_v7 = vmul.f32 1.442695, %v328_v47  ;;  %v253_v17 = vmul.f32 0.6931472, %v1141_v41 }
  0x6a   :  { %v748_v28 = vpop.eup %747  ;;  %773 = vpow2.f32 %v385_v45  ;;  %v331_v45 = vmul.f32 %v1012_v31, %v249_v58  ;;  %v395_v26 = vmul.f32 1.442695, %v1257_v44  ;;  %v437_v36 = vmul.f32 1.442695, %v329_v37 }
  0x6b   :  { %v750_v19 = vpop.eup %749  ;;  %775 = vpow2.f32 %v427_v39  ;;  %v486_v11 = vadd.f32 %v744_v49, %v485_v23  ;;  %v255_v8 = vmul.f32 0.6931472, %v1154_v56  ;;  %v332_v57 = vmul.f32 %v1012_v31, %v251_v48 }
  0x6c   :  { %v752_v52 = vpop.eup %751  ;;  %777 = vpow2.f32 %v387_v53  ;;  %v397_v53 = vmul.f32 1.442695, %v1261_v42  ;;  %v439_v41 = vmul.f32 1.442695, %v330_v0  ;;  %v257_v44 = vmul.f32 0.6931472, %v1160_v63 }
  0x6d   :  { %v754_v2 = vpop.eup %753  ;;  %779 = vpow2.f32 %v429_v6  ;;  %v487_v22 = vadd.f32 %v746_v50, %v486_v11  ;;  %v333_v34 = vmul.f32 %v1012_v31, %v253_v17  ;;  %v441_v56 = vmul.f32 1.442695, %v331_v45 }
  0x6e   :  { %v756_v35 = vpop.eup %755  ;;  %781 = vpow2.f32 %v389_v16  ;;  %v259_v42 = vmul.f32 0.6931472, %v1171_v51  ;;  %v334_v58 = vmul.f32 %v1012_v31, %v255_v8  ;;  %v443_v63 = vmul.f32 1.442695, %v332_v57 }
  0x6f   :  { %v758_v32 = vpop.eup %757  ;;  %783 = vpow2.f32 %v431_v12  ;;  %v514_v60 = vadd.f32 %v756_v35, %v754_v2  ;;  %v488_v39 = vadd.f32 %v748_v28, %v487_v22  ;;  %v399_v28 = vmul.f32 1.442695, %v1269_v30 }
  0x70   :  { %v760_v46 = vpop.eup %759  ;;  %785 = vpow2.f32 %v391_v59  ;;  %v261_v30 = vmul.f32 0.6931472, %v1176_v10  ;;  %v335_v11 = vmul.f32 %v1012_v31, %v257_v44  ;;  %v445_v51 = vmul.f32 1.442695, %v333_v34 }
  0x71   :  { %v762_v40 = vpop.eup %761  ;;  %787 = vpow2.f32 %v433_v43  ;;  %v515_v20 = vadd.f32 %v758_v32, %v514_v60  ;;  %v489_v55 = vadd.f32 %v750_v19, %v488_v39  ;;  %v401_v19 = vmul.f32 1.442695, %v1277_v21 }
  0x72   :  { %v764_v49 = vpop.eup %763  ;;  %789 = vpow2.f32 %v393_v29  ;;  %v263_v21 = vmul.f32 0.6931472, %v1185_v1  ;;  %v336_v32 = vmul.f32 %v1012_v31, %v259_v42  ;;  %v447_v10 = vmul.f32 1.442695, %v334_v58 }
  0x73   :  { %v766_v50 = vpop.eup %765  ;;  %791 = vpow2.f32 %v435_v7  ;;  %v516_v6 = vadd.f32 %v760_v46, %v515_v20  ;;  %v490_v47 = vadd.f32 %v752_v52, %v489_v55  ;;  %v403_v52 = vmul.f32 1.442695, %v1286_v4 }
  0x74   :  { %v768_v27 = vpop.eup %767  ;;  %793 = vpow2.f32 %v395_v26  ;;  %v405_v7 = vmul.f32 1.442695, %v1293_v9  ;;  %v265_v4 = vmul.f32 0.6931472, %v1191_v5  ;;  %v316_v45 = vmul.f32 %v1012_v31, %v1166_v14 }
  0x75   :  { %v770_v16 = vpop.eup %769  ;;  %795 = vpow2.f32 %v437_v36  ;;  %v517_v12 = vadd.f32 %v764_v49, %v516_v6  ;;  %v491_v2 = vadd.f32 %v762_v40, %v490_v47  ;;  %v337_v26 = vmul.f32 %v1012_v31, %v261_v30 }
  0x76   :  { %v772_v23 = vpop.eup %771  ;;  %797 = vpow2.f32 %v397_v53  ;;  %v449_v40 = vmul.f32 1.442695, %v335_v11  ;;  %v267_v20 = vmul.f32 0.6931472, %v1200_v61  ;;  %v338_v49 = vmul.f32 %v1012_v31, %v263_v21 }
  0x77   :  { %v774_v59 = vpop.eup %773  ;;  %799 = vpow2.f32 %v439_v41  ;;  %v518_v37 = vadd.f32 %v768_v27, %v517_v12  ;;  %v492_v48 = vadd.f32 %v766_v50, %v491_v2  ;;  %v407_v8 = vmul.f32 1.442695, %v1300_v54 }
  0x78   :  { %v776_v43 = vpop.eup %775  ;;  %801 = vpow2.f32 %v399_v28  ;;  %v451_v57 = vmul.f32 1.442695, %v336_v32  ;;  %v269_v41 = vmul.f32 0.6931472, %v1205_v3  ;;  %v339_v55 = vmul.f32 %v1012_v31, %v265_v4 }
  0x79   :  { %v778_v35 = vpop.eup %777  ;;  %803 = vpow2.f32 %v441_v56  ;;  %v519_v0 = vadd.f32 %v772_v23, %v518_v37  ;;  %v493_v60 = vadd.f32 %v770_v16, %v492_v48  ;;  %v409_v6 = vmul.f32 1.442695, %v1307_v18 }
  0x7a   :  { %v780_v29 = vpop.eup %779  ;;  %805 = vpow2.f32 %v401_v19  ;;  %v453_v27 = vmul.f32 1.442695, %v337_v26  ;;  %v271_v28 = vmul.f32 0.6931472, %v1224_v25  ;;  %v340_v16 = vmul.f32 %v1012_v31, %v267_v20 }
  0x7b   :  { %v782_v22 = vpop.eup %781  ;;  %807 = vpow2.f32 %v443_v63  ;;  %v520_v46 = vadd.f32 %v776_v43, %v519_v0  ;;  %v494_v36 = vadd.f32 %v774_v59, %v493_v60  ;;  %v411_v56 = vmul.f32 1.442695, %v316_v45 }
  0x7c   :  { %v784_v17 = vpop.eup %783  ;;  %809 = vpow2.f32 %v403_v52  ;;  %v455_v3 = vmul.f32 1.442695, %v338_v49  ;;  %v273_v42 = vmul.f32 0.6931472, %v1236_v62  ;;  %v341_v58 = vmul.f32 %v1012_v31, %v269_v41 }
  0x7d   :  { %v786_v1 = vpop.eup %785  ;;  %811 = vpow2.f32 %v445_v51  ;;  %v521_v39 = vadd.f32 %v780_v29, %v520_v46  ;;  %v495_v14 = vadd.f32 %v778_v35, %v494_v36  ;;  %v457_v59 = vmul.f32 1.442695, %v339_v55 }
  0x7e   :  { %v788_v9 = vpop.eup %787  ;;  %813 = vpow2.f32 %v405_v7  ;;  %v275_v37 = vmul.f32 0.6931472, %v1244_v38  ;;  %v342_v43 = vmul.f32 %v1012_v31, %v271_v28  ;;  %v459_v11 = vmul.f32 1.442695, %v340_v16 }
  0x7f   :  { %v790_v5 = vpop.eup %789  ;;  %815 = vpow2.f32 %v447_v10  ;;  %v522_v53 = vadd.f32 %v784_v17, %v521_v39  ;;  %v496_v44 = vadd.f32 %v782_v22, %v495_v14  ;;  %v277_v51 = vmul.f32 0.6931472, %v1252_v24 }
  0x80   :  { %v792_v50 = vpop.eup %791  ;;  %817 = vrcp.f32 %v1012_v31  ;;  %v343_v48 = vmul.f32 %v1012_v31, %v273_v42  ;;  %v461_v29 = vmul.f32 1.442695, %v341_v58  ;;  %v279_v38 = vmul.f32 0.6931472, %v1263_v15 }
  0x81   :  { %v794_v61 = vpop.eup %793  ;;  %819 = vpow2.f32 %v449_v40  ;;  %v523_v34 = vadd.f32 %v788_v9, %v522_v53  ;;  %v497_v12 = vadd.f32 %v786_v1, %v496_v44  ;;  %v344_v22 = vmul.f32 %v1012_v31, %v275_v37 }
  0x82   :  { %v796_v54 = vpop.eup %795  ;;  %821 = vpow2.f32 %v407_v8  ;;  %v463_v60 = vmul.f32 1.442695, %v342_v43  ;;  %v281_v24 = vmul.f32 0.6931472, %v1271_v33  ;;  %v345_v45 = vmul.f32 %v1012_v31, %v277_v51 }
  0x83   :  { %v798_v47 = vpop.eup %797  ;;  %823 = vpow2.f32 %v451_v57  ;;  %v524_v23 = vadd.f32 %v792_v50, %v523_v34  ;;  %v498_v63 = vadd.f32 %v790_v5, %v497_v12  ;;  %v465_v1 = vmul.f32 1.442695, %v343_v48 }
  0x84   :  { %v800_v18 = vpop.eup %799  ;;  %825 = vpow2.f32 %v409_v6  ;;  %v283_v15 = vmul.f32 0.6931472, %v1280_v13  ;;  %v346_v9 = vmul.f32 %v1012_v31, %v279_v38  ;;  %v467_v49 = vmul.f32 1.442695, %v344_v22 }
  0x85   :  { %v802_v19 = vpop.eup %801  ;;  %827 = vpow2.f32 %v453_v27  ;;  %v525_v25 = vadd.f32 %v796_v54, %v524_v23  ;;  %v499_v52 = vadd.f32 %v794_v61, %v498_v63  ;;  %v347_v33 = vmul.f32 %v1012_v31, %v281_v24 }
  0x86   :  { %v804_v2 = vpop.eup %803  ;;  %829 = vpow2.f32 %v411_v56  ;;  %v469_v53 = vmul.f32 1.442695, %v345_v45  ;;  %v348_v6 = vmul.f32 %v1012_v31, %v283_v15  ;;  %v471_v61 = vmul.f32 1.442695, %v346_v9 }
  0x87   :  { %v806_v30 = vpop.eup %805  ;;  %831 = vpow2.f32 %v455_v3  ;;  %v526_v35 = vadd.f32 %v800_v18, %v525_v25  ;;  %v500_v21 = vadd.f32 %v798_v47, %v499_v52  ;;  %v473_v54 = vmul.f32 1.442695, %v347_v33 }
  0x88   :  { %v808_v62 = vpop.eup %807  ;;  %833 = vpow2.f32 %v457_v59  ;;  %v475_v47 = vmul.f32 1.442695, %v348_v6 }
  0x89   :  { %v810_v0 = vpop.eup %809  ;;  %v527_v32 = vadd.f32 %v804_v2, %v526_v35  ;;  %835 = vpow2.f32 %v459_v11  ;;  %v501_v46 = vadd.f32 %v802_v19, %v500_v21 }
  0x8a   :  { %v812_v7 = vpop.eup %811  ;;  %837 = vpow2.f32 %v461_v29 }
  0x8b   :  { %v814_v10 = vpop.eup %813  ;;  %v528_v17 = vadd.f32 %v808_v62, %v527_v32  ;;  %v502_v40 = vadd.f32 %v806_v30, %v501_v46  ;;  %839 = vpow2.f32 %v463_v60 }
  0x8c   :  { %v816_v4 = vpop.eup %815  ;;  %841 = vpow2.f32 %v465_v1 }
  0x8d   :  { %v818_v26 = vpop.eup %817  ;;  %v529_v36 = vadd.f32 %v812_v7, %v528_v17  ;;  %v503_v8 = vadd.f32 %v810_v0, %v502_v40  ;;  %843 = vpow2.f32 %v467_v49 }
  0x8e   :  { %v820_v39 = vpop.eup %819  ;;  %589 = vpush %v818_v26  ;;  %845 = vpow2.f32 %v469_v53 }
  0x8f   :  { %v822_v20 = vpop.eup %821  ;;  %v530_v5 = vadd.f32 %v816_v4, %v529_v36  ;;  %v504_v50 = vadd.f32 %v814_v10, %v503_v8  ;;  %847 = vpow2.f32 %v471_v61 }
  0x90   :  { %v824_v57 = vpop.eup %823  ;;  %849 = vpow2.f32 %v473_v54 }
  0x91   :  { %v826_v14 = vpop.eup %825  ;;  %v531_v41 = vadd.f32 %v820_v39, %v530_v5  ;;  %v505_v27 = vadd.f32 %v822_v20, %v504_v50  ;;  %851 = vpow2.f32 %v475_v47 }
  0x92   :  { %v828_v55 = vpop.eup %827 }
  0x93   :  { %v830_v13 = vpop.eup %829  ;;  %v532_v44 = vadd.f32 %v824_v57, %v531_v41  ;;  %v506_v28 = vadd.f32 %v826_v14, %v505_v27 }
  0x94   :  { %v832_v34 = vpop.eup %831 }
  0x95   :  { %v533_v16 = vadd.f32 %v828_v55, %v532_v44  ;;  %v834_v56 = vpop.eup %833  ;;  %v507_v3 = vadd.f32 %v830_v13, %v506_v28 }
  0x96   :  { %v836_v23 = vpop.eup %835 }
  0x97   :  { %v534_v12 = vadd.f32 %v832_v34, %v533_v16  ;;  %v508_v18 = vrot.slane %v507_v3, 4  ;;  %v838_v31 = vpop.eup %837 }
  0x98   :  { %v840_v59 = vpop.eup %839 }
  0x99   :  { %v535_v42 = vadd.f32 %v834_v56, %v534_v12  ;;  %v509_v58 = vadd.f32 %v508_v18, %v507_v3  ;;  %v842_v2 = vpop.eup %841 }
  0x9a   :  { %v844_v43 = vpop.eup %843 }
  0x9b   :  { %v536_v19 = vadd.f32 %v836_v23, %v535_v42  ;;  %v510_v63 = vrot.slane %v509_v58, 2  ;;  %v846_v52 = vpop.eup %845 }
  0x9c   :  { %v848_v62 = vpop.eup %847 }
  0x9d   :  { %v537_v25 = vadd.f32 %v838_v31, %v536_v19  ;;  %v511_v30 = vadd.f32 %v510_v63, %v509_v58  ;;  %v850_v0 = vpop.eup %849 }
  0x9e   :  { %v852_v21 = vpop.eup %851 }
  0x9f   :  { %v538_v37 = vadd.f32 %v840_v59, %v537_v25  ;;  %v512_v51 = vrot.slane %v511_v30, 1 }
  0xa1   :  { %v539_v11 = vadd.f32 %v842_v2, %v538_v37  ;;  %v513_v32 = vadd.f32 %v512_v51, %v511_v30 }
  0xa3   :  { %v540_v35 = vadd.f32 %v844_v43, %v539_v11  ;;  %v552_v10 = vmul.f32 0.00390625, %v513_v32 }
  0xa5   :  { %v541_v48 = vadd.f32 %v846_v52, %v540_v35  ;;  %853 = vlog2.f32 %v552_v10 }
  0xa7   :  { %v542_v29 = vadd.f32 %v848_v62, %v541_v48 }
  0xa9   :  { %v543_v7 = vadd.f32 %v850_v0, %v542_v29 }
  0xab   :  { %v544_v38 = vadd.f32 %v852_v21, %v543_v7 }
  0xad   :  { %v545_v22 = vrot.slane %v544_v38, 4 }
  0xaf   :  { %v546_v60 = vadd.f32 %v545_v22, %v544_v38 }
  0xb1   :  { %v547_v46 = vrot.slane %v546_v60, 2 }
  0xb2   :  { %v854_v26 = vpop.eup %853 }
  0xb3   :  { %v548_v17 = vadd.f32 %v547_v46, %v546_v60  ;;  %v555_v1 = vmul.f32 0.6931472, %v854_v26 }
  0xb5   :  { %v549_v4 = vrot.slane %v548_v17, 1 }
  0xb7   :  { %v550_v24 = vadd.f32 %v549_v4, %v548_v17 }
  0xb9   :  { %v553_v45 = vmul.f32 0.00390625, %v550_v24 }
  0xbb   :  { %855 = vlog2.f32 %v553_v45 }
  0xbf   :  { %s590_s0 = spop %589 }
  0xc0   :  { %v561_v40 = vstv %s590_s0 }
  0xc1   :  { %v562_v36 = vmul.f32 %v561_v40, %v555_v1 }
  0xc3   :  { %v564_v9 = vmul.f32 1.442695, %v562_v36 }
  0xc5   :  { %857 = vpow2.f32 %v564_v9 }
  0xc8   :  { %v856_v39 = vpop.eup %855 }
  0xc9   :  { %v557_v15 = vmul.f32 0.6931472, %v856_v39 }
  0xcb   :  { %v563_v20 = vmul.f32 %v561_v40, %v557_v15 }
  0xcd   :  { %v566_v49 = vmul.f32 1.442695, %v563_v20 }
  0xcf   :  { %859 = vpow2.f32 %v566_v49 }
  0xd2   :  { %v858_v8 = vpop.eup %857 }
  0xdc   :  { %v860_v5 = vpop.eup %859 }
  0xdd   :  { %v571_v57 = vsel %vm570_vm0, %v860_v5, %v858_v8 }
  0xde   :  { %573 = vst [vmem:[#allocation6] sm:$0x3] %v571_v57 }
  0xdf   :  { %892 = shalt.err (!%p889_p9)
}
  0xe0   :  { %583 = dma.vmem_to_hbm [thread:$0]  %s581_s18, 32, %s1364_s2, [#allocation5]  }
  0xe1   :  { %903 = dma.done.wait [#allocation5], 32  }
  0xe2   :  { %904 = vsyncadd [#allocation5], 4294967264 }
  0xe3   :  { %587 = vsyncpa [#allocation4], 1 }
  0xe4   :  { %588 = vsyncpa [#allocation5], 1 }

</bundles_post_ra>
